<compile_context>
chip_gen: v7x
topology: tpu7x:2x2x1
jax: 0.10.0
libtpu: 0.0.40
codegen_flags: <defaults>
</compile_context>

<pallas_src>
import functools

import jax
import jax.numpy as jnp
from jax.experimental import pallas as pl
from jax.experimental.pallas import tpu as pltpu

EPS = 1e-5  # PyTorch GroupNorm default eps


def _mish(v):
    # mish(x) = x * tanh(softplus(x)) = x * (1 - 2 / ((1+e^x)^2 + 1))
    # single exp (vs exp + log1p + tanh); e=inf saturates cleanly to x.
    e = jnp.exp(v)
    t = 1.0 + e
    return v * (1.0 - 2.0 / (t * t + 1.0))


def _shift_lanes(h, s, L):
    """Shift columns right by s (left if s < 0), filling with zeros."""
    if s == 0:
        return h
    z = jnp.zeros((h.shape[0], abs(s)), h.dtype)
    if s > 0:
        return jnp.concatenate([z, h[:, :L - s]], axis=1)
    return jnp.concatenate([h[:, -s:], z], axis=1)


def film_resblock_kernel(*refs, K, T, Bb, C_out, has_res):
    if has_res:
        (x_ref, tpos_ref, seg_ref, segT_ref, sc_ref, bi_ref,
         w1_ref, b1_ref, g1_ref, bt1_ref,
         w2_ref, b2_ref, g2_ref, bt2_ref,
         wr_ref, br_ref, out_ref) = refs
    else:
        (x_ref, tpos_ref, seg_ref, segT_ref, sc_ref, bi_ref,
         w1_ref, b1_ref, g1_ref, bt1_ref,
         w2_ref, b2_ref, g2_ref, bt2_ref, out_ref) = refs
        wr_ref = br_ref = None

    pad = K // 2
    L = Bb * T
    inv_n = 1.0 / float(C_out * T)

    x = x_ref[...]            # (C_in, L)  lane-dense (B*T on lanes)
    tpos = tpos_ref[...]      # (1, L) int32: t-index within each sample
    seg = seg_ref[...]        # (L, Bb)  per-sample segment-sum matrix
    segT = segT_ref[...]      # (Bb, L)  broadcast-back matrix

    def conv(h, ws_ref, b_col):
        # 'same' Conv1d over each sample's length-T segment as ONE stacked
        # matmul. im2col rows [k*C + c] are lane-shifted copies of h, masked
        # where the source index falls outside the sample (implicit zero pad).
        pieces = []
        for k in range(K):
            if k == pad:
                pieces.append(h)
            else:
                shifted = _shift_lanes(h, pad - k, L)
                src = tpos + (k - pad)
                valid = (src >= 0) & (src < T)
                pieces.append(jnp.where(valid, shifted, jnp.zeros((), h.dtype)))
        col = jnp.concatenate(pieces, axis=0)            # (K*C, L)
        return jnp.dot(ws_ref[...], col,
                       preferred_element_type=jnp.float32) + b_col

    def group_norm(h, gamma, beta):
        # GroupNorm(n_groups=1): per-sample stats over (C_out, T), fused
        # sum / sum-of-squares pass via the segment-sum matmul (no reshapes
        # that split the lane axis).
        s1 = jnp.sum(jnp.dot(h, seg, preferred_element_type=jnp.float32),
                     axis=0, keepdims=True)              # (1, Bb)
        s2 = jnp.sum(jnp.dot(h * h, seg, preferred_element_type=jnp.float32),
                     axis=0, keepdims=True)              # (1, Bb)
        mean = s1 * inv_n
        var = s2 * inv_n - mean * mean
        rstd = jax.lax.rsqrt(var + EPS)
        mean_l = jnp.dot(mean, segT, preferred_element_type=jnp.float32)  # (1, L)
        rstd_l = jnp.dot(rstd, segT, preferred_element_type=jnp.float32)  # (1, L)
        return (h - mean_l) * rstd_l * gamma + beta

    # --- blocks[0]: Conv1d -> GroupNorm(1) -> Mish -------------------------
    h = conv(x, w1_ref, b1_ref[...])
    h = _mish(group_norm(h, g1_ref[...], bt1_ref[...]))

    # --- FiLM (linear hoisted to wrapper): scale * h + bias ----------------
    h = sc_ref[...] * h + bi_ref[...]

    # --- blocks[1]: Conv1d -> GroupNorm(1) -> Mish -------------------------
    h = conv(h, w2_ref, b2_ref[...])
    h = _mish(group_norm(h, g2_ref[...], bt2_ref[...]))

    # --- residual: 1x1 conv, or plain add when C_in == C_out ---------------
    if has_res:
        res = jnp.dot(wr_ref[...], x,
                      preferred_element_type=jnp.float32) + br_ref[...]
    else:
        res = x.astype(jnp.float32)

    out_ref[...] = (h + res).astype(out_ref.dtype)


def _pick_batch_tile(B, T, max_lanes=2048):
    """Whole batch per step when it fits; otherwise the largest batch tile that
    keeps the lane axis a multiple of 128 (falls back to the full batch)."""
    if B * T <= max_lanes:
        return B
    best = B
    for d in range(1, B):
        if B % d == 0 and (d * T) % 128 == 0 and d * T <= max_lanes:
            best = d
    return best


def film_conditional_residual_block_1d(x, cond, params, *, kernel_size=3,
                                       vmem_limit_bytes=None):
    B, C_in, T = x.shape
    C_out = params['b1'].shape[0]
    K = kernel_size
    has_res = 'wr' in params
    assert has_res or C_in == C_out

    Bb = _pick_batch_tile(B, T)
    grid = (B // Bb,)
    L = Bb * T
    f32 = jnp.float32
    col = lambda v: v.reshape(-1, 1).astype(f32)

    # channel-major, lane-dense activations: (C_in, B*T), B*T on the lane axis
    x2 = jnp.transpose(x, (1, 0, 2)).reshape(C_in, B * T)

    # FiLM linear hoisted out of the kernel: one batched matmul for all B.
    emb = _mish(cond.astype(f32)) @ params['wl'].astype(f32).T + params['bl'].astype(f32)
    scale = jnp.repeat(emb[:, :C_out].T, T, axis=1)      # (C_out, B*T)
    bias = jnp.repeat(emb[:, C_out:].T, T, axis=1)       # (C_out, B*T)

    # conv weights: torch (C_out, C, K) -> stacked (C_out, K*C), k-major rows
    stack_w = lambda w: jnp.transpose(w, (0, 2, 1)).reshape(w.shape[0], -1).astype(f32)
    w1s, w2s = stack_w(params['w1']), stack_w(params['w2'])

    # per-batch-tile helpers (identical content for every grid step)
    seg = jnp.repeat(jnp.eye(Bb, dtype=f32), T, axis=0)            # (L, Bb)
    segT = seg.T                                                   # (Bb, L)
    tpos = jnp.tile(jnp.arange(T, dtype=jnp.int32), B)[None, :]    # (1, B*T)

    args = [x2, tpos, seg, segT, scale, bias,
            w1s, col(params['b1']), col(params['g1']), col(params['bt1']),
            w2s, col(params['b2']), col(params['g2']), col(params['bt2'])]
    if has_res:
        args += [params['wr'].astype(f32), col(params['br'])]

    tiled = lambda a: pl.BlockSpec((a.shape[0], L), lambda b: (0, b))
    const = lambda a: pl.BlockSpec(a.shape, lambda b: (0,) * a.ndim)
    in_specs = ([tiled(x2), tiled(tpos), const(seg), const(segT),
                 tiled(scale), tiled(bias)] + [const(a) for a in args[6:]])
    out_spec = pl.BlockSpec((C_out, L), lambda b: (0, b))

    kernel = functools.partial(film_resblock_kernel, K=K, T=T, Bb=Bb,
                               C_out=C_out, has_res=has_res)

    cp_kwargs = dict(dimension_semantics=("parallel",))
    if vmem_limit_bytes is not None:
        # raise the scoped VMEM limit when channel counts grow (v6e/v7x note).
        cp_kwargs["vmem_limit_bytes"] = vmem_limit_bytes

    out2 = pl.pallas_call(
        kernel,
        out_shape=jax.ShapeDtypeStruct((C_out, B * T), x.dtype),
        grid_spec=pltpu.PrefetchScalarGridSpec(
            num_scalar_prefetch=0,
            grid=grid,
            in_specs=in_specs,
            out_specs=out_spec,
        ),
        compiler_params=pltpu.CompilerParams(**cp_kwargs),
    )(*args)

    # lane-dense (C_out, B*T) -> module layout (B, C_out, T)
    return jnp.transpose(out2.reshape(C_out, B, T), (1, 0, 2))


def init_params(key, C_in, C_out, cond_dim, K):
    ks = jax.random.split(key, 10)
    s = 0.1
    p = {
        'w1': jax.random.normal(ks[0], (C_out, C_in, K), jnp.float32) * s,
        'b1': jax.random.normal(ks[1], (C_out,), jnp.float32) * s,
        'g1': 1.0 + jax.random.normal(ks[2], (C_out,), jnp.float32) * s,
        'bt1': jax.random.normal(ks[3], (C_out,), jnp.float32) * s,
        'w2': jax.random.normal(ks[4], (C_out, C_out, K), jnp.float32) * s,
        'b2': jax.random.normal(ks[5], (C_out,), jnp.float32) * s,
        'g2': 1.0 + jax.random.normal(ks[6], (C_out,), jnp.float32) * s,
        'bt2': jax.random.normal(ks[7], (C_out,), jnp.float32) * s,
        'wl': jax.random.normal(ks[8], (2 * C_out, cond_dim), jnp.float32) * s,
        'bl': jax.random.normal(ks[9], (2 * C_out,), jnp.float32) * s,
    }
    if C_in != C_out:
        kr1, kr2 = jax.random.split(ks[0], 2)
        p['wr'] = jax.random.normal(kr1, (C_out, C_in), jnp.float32) * s
        p['br'] = jax.random.normal(kr2, (C_out,), jnp.float32) * s
    return p


def reference(x, cond, params, K):
    # Pure-JAX reference mirroring the PyTorch forward pass (classic mish form).
    mish = lambda v: v * jnp.tanh(jnp.log1p(jnp.exp(v)))

    def conv1d(h, w, b):
        return jax.lax.conv_general_dilated(
            h, w, window_strides=(1,), padding=[(K // 2, K // 2)],
            dimension_numbers=('NCH', 'OIH', 'NCH')) + b[None, :, None]

    def gn(h, gamma, beta):
        mean = jnp.mean(h, axis=(1, 2), keepdims=True)
        var = jnp.mean((h - mean) ** 2, axis=(1, 2), keepdims=True)
        return (h - mean) / jnp.sqrt(var + EPS) * gamma[None, :, None] + beta[None, :, None]

    C_out = params['b1'].shape[0]
    out = mish(gn(conv1d(x, params['w1'], params['b1']), params['g1'], params['bt1']))
    embed = mish(cond) @ params['wl'].T + params['bl']
    scale = embed[:, :C_out][:, :, None]
    bias = embed[:, C_out:][:, :, None]
    out = scale * out + bias
    out = mish(gn(conv1d(out, params['w2'], params['b2']), params['g2'], params['bt2']))
    if 'wr' in params:
        res = jnp.einsum('oc,bct->bot', params['wr'], x) + params['br'][None, :, None]
    else:
        res = x
    return out + res


if __name__ == "__main__":
    key = jax.random.PRNGKey(0)
    B, T, cond_dim, K = 2, 16, 32, 3
    # (C_in != C_out) exercises the 1x1 residual conv; (C_in == C_out) the
    # identity residual path (no matmul, static flag).
    for C_in, C_out in [(8, 16), (16, 16)]:
        key, kx, kc, kp = jax.random.split(key, 4)
        x = jax.random.normal(kx, (B, C_in, T), jnp.float32)
        cond = jax.random.normal(kc, (B, cond_dim), jnp.float32)
        params = init_params(kp, C_in, C_out, cond_dim, K)

        out = jax.block_until_ready(
            film_conditional_residual_block_1d(x, cond, params, kernel_size=K))
        ref = reference(x, cond, params, K)

        assert out.shape == (B, C_out, T)
        max_err = float(jnp.max(jnp.abs(out - ref)))
        assert jnp.allclose(out, ref, atol=1e-4, rtol=1e-4), f"max abs err {max_err}"
    print("KERNEL_OK")
</pallas_src>

<mosaic_0001>
module attributes {stable_mosaic.version = 11 : i64} {
  func.func @film_resblock_kernel(%arg0: i32, %arg1: memref<8x32xf32, #tpu.memory_space<vmem>>, %arg2: memref<1x32xi32, #tpu.memory_space<vmem>>, %arg3: memref<32x2xf32, #tpu.memory_space<vmem>>, %arg4: memref<2x32xf32, #tpu.memory_space<vmem>>, %arg5: memref<16x32xf32, #tpu.memory_space<vmem>>, %arg6: memref<16x32xf32, #tpu.memory_space<vmem>>, %arg7: memref<16x24xf32, #tpu.memory_space<vmem>>, %arg8: memref<16x1xf32, #tpu.memory_space<vmem>>, %arg9: memref<16x1xf32, #tpu.memory_space<vmem>>, %arg10: memref<16x1xf32, #tpu.memory_space<vmem>>, %arg11: memref<16x48xf32, #tpu.memory_space<vmem>>, %arg12: memref<16x1xf32, #tpu.memory_space<vmem>>, %arg13: memref<16x1xf32, #tpu.memory_space<vmem>>, %arg14: memref<16x1xf32, #tpu.memory_space<vmem>>, %arg15: memref<16x8xf32, #tpu.memory_space<vmem>>, %arg16: memref<16x1xf32, #tpu.memory_space<vmem>>, %arg17: memref<16x32xf32, #tpu.memory_space<vmem>>) attributes {dimension_semantics = [#tpu.dimension_semantics<parallel>], iteration_bounds = array<i64: 1>, scalar_prefetch = 0 : i64, scratch_operands = 0 : i64, tpu.core_type = #tpu.core_type<tc>, window_params = [{transform_indices = @transform_0, window_bounds = array<i64: 8, 32>}, {transform_indices = @transform_1, window_bounds = array<i64: 1, 32>}, {pipeline_mode = #tpu.pipeline_mode<synchronous>, transform_indices = @transform_2, window_bounds = array<i64: 32, 2>}, {pipeline_mode = #tpu.pipeline_mode<synchronous>, transform_indices = @transform_3, window_bounds = array<i64: 2, 32>}, {transform_indices = @transform_4, window_bounds = array<i64: 16, 32>}, {transform_indices = @transform_5, window_bounds = array<i64: 16, 32>}, {pipeline_mode = #tpu.pipeline_mode<synchronous>, transform_indices = @transform_6, window_bounds = array<i64: 16, 24>}, {pipeline_mode = #tpu.pipeline_mode<synchronous>, transform_indices = @transform_7, window_bounds = array<i64: 16, 1>}, {pipeline_mode = #tpu.pipeline_mode<synchronous>, transform_indices = @transform_8, window_bounds = array<i64: 16, 1>}, {pipeline_mode = #tpu.pipeline_mode<synchronous>, transform_indices = @transform_9, window_bounds = array<i64: 16, 1>}, {pipeline_mode = #tpu.pipeline_mode<synchronous>, transform_indices = @transform_10, window_bounds = array<i64: 16, 48>}, {pipeline_mode = #tpu.pipeline_mode<synchronous>, transform_indices = @transform_11, window_bounds = array<i64: 16, 1>}, {pipeline_mode = #tpu.pipeline_mode<synchronous>, transform_indices = @transform_12, window_bounds = array<i64: 16, 1>}, {pipeline_mode = #tpu.pipeline_mode<synchronous>, transform_indices = @transform_13, window_bounds = array<i64: 16, 1>}, {pipeline_mode = #tpu.pipeline_mode<synchronous>, transform_indices = @transform_14, window_bounds = array<i64: 16, 8>}, {pipeline_mode = #tpu.pipeline_mode<synchronous>, transform_indices = @transform_15, window_bounds = array<i64: 16, 1>}, {transform_indices = @transform_16, window_bounds = array<i64: 16, 32>}]} {
    %c0 = arith.constant 0 : index
    %c0_0 = arith.constant 0 : index
    %0 = vector.load %arg1[%c0, %c0_0] : memref<8x32xf32, #tpu.memory_space<vmem>>, vector<8x32xf32>
    %c0_1 = arith.constant 0 : index
    %c0_2 = arith.constant 0 : index
    %1 = vector.load %arg2[%c0_1, %c0_2] : memref<1x32xi32, #tpu.memory_space<vmem>>, vector<1x32xi32>
    %c0_3 = arith.constant 0 : index
    %c0_4 = arith.constant 0 : index
    %2 = vector.load %arg3[%c0_3, %c0_4] : memref<32x2xf32, #tpu.memory_space<vmem>>, vector<32x2xf32>
    %c0_5 = arith.constant 0 : index
    %c0_6 = arith.constant 0 : index
    %3 = vector.load %arg4[%c0_5, %c0_6] : memref<2x32xf32, #tpu.memory_space<vmem>>, vector<2x32xf32>
    %c0_7 = arith.constant 0 : index
    %c0_8 = arith.constant 0 : index
    %4 = vector.load %arg8[%c0_7, %c0_8] : memref<16x1xf32, #tpu.memory_space<vmem>>, vector<16x1xf32>
    %cst = arith.constant 0.000000e+00 : f32
    %5 = vector.broadcast %cst : f32 to vector<8x1xf32>
    %6 = vector.extract_strided_slice %0 {offsets = [0, 0], sizes = [8, 31], strides = [1, 1]} : vector<8x32xf32> to vector<8x31xf32>
    %7 = tpu.concatenate %5, %6 in 1 : vector<8x1xf32>, vector<8x31xf32> -> vector<8x32xf32>
    %c-1_i32 = arith.constant -1 : i32
    %8 = vector.broadcast %c-1_i32 : i32 to vector<1x32xi32>
    %9 = arith.addi %1, %8 : vector<1x32xi32>
    %c0_i32 = arith.constant 0 : i32
    %10 = vector.broadcast %c0_i32 : i32 to vector<1x32xi32>
    %11 = arith.cmpi sge, %9, %10 : vector<1x32xi32>
    %c16_i32 = arith.constant 16 : i32
    %12 = vector.broadcast %c16_i32 : i32 to vector<1x32xi32>
    %13 = arith.cmpi slt, %9, %12 : vector<1x32xi32>
    %14 = arith.andi %11, %13 : vector<1x32xi1>
    %cst_9 = arith.constant 0.000000e+00 : f32
    %15 = vector.shape_cast %14 : vector<1x32xi1> to vector<1x32xi1>
    %16 = vector.broadcast %15 : vector<1x32xi1> to vector<8x32xi1>
    %17 = vector.broadcast %cst_9 : f32 to vector<8x32xf32>
    %18 = arith.select %16, %7, %17 : vector<8x32xi1>, vector<8x32xf32>
    %cst_10 = arith.constant 0.000000e+00 : f32
    %19 = vector.broadcast %cst_10 : f32 to vector<8x1xf32>
    %20 = vector.extract_strided_slice %0 {offsets = [0, 1], sizes = [8, 31], strides = [1, 1]} : vector<8x32xf32> to vector<8x31xf32>
    %21 = tpu.concatenate %20, %19 in 1 : vector<8x31xf32>, vector<8x1xf32> -> vector<8x32xf32>
    %c1_i32 = arith.constant 1 : i32
    %22 = vector.broadcast %c1_i32 : i32 to vector<1x32xi32>
    %23 = arith.addi %1, %22 : vector<1x32xi32>
    %c0_i32_11 = arith.constant 0 : i32
    %24 = vector.broadcast %c0_i32_11 : i32 to vector<1x32xi32>
    %25 = arith.cmpi sge, %23, %24 : vector<1x32xi32>
    %c16_i32_12 = arith.constant 16 : i32
    %26 = vector.broadcast %c16_i32_12 : i32 to vector<1x32xi32>
    %27 = arith.cmpi slt, %23, %26 : vector<1x32xi32>
    %28 = arith.andi %25, %27 : vector<1x32xi1>
    %cst_13 = arith.constant 0.000000e+00 : f32
    %29 = vector.shape_cast %28 : vector<1x32xi1> to vector<1x32xi1>
    %30 = vector.broadcast %29 : vector<1x32xi1> to vector<8x32xi1>
    %31 = vector.broadcast %cst_13 : f32 to vector<8x32xf32>
    %32 = arith.select %30, %21, %31 : vector<8x32xi1>, vector<8x32xf32>
    %33 = tpu.concatenate %18, %0, %32 in 0 : vector<8x32xf32>, vector<8x32xf32>, vector<8x32xf32> -> vector<24x32xf32>
    %c0_14 = arith.constant 0 : index
    %c0_15 = arith.constant 0 : index
    %34 = vector.load %arg7[%c0_14, %c0_15] : memref<16x24xf32, #tpu.memory_space<vmem>>, vector<16x24xf32>
    %cst_16 = arith.constant dense<0.000000e+00> : vector<16x32xf32>
    %35 = tpu.matmul %34, %33, %cst_16 {dimension_numbers = #tpu.dot_dimension_numbers<[1], [0], [0], [1], [0, 0, 1, 1], [], []>} : vector<16x24xf32>, vector<24x32xf32>, vector<16x32xf32> -> vector<16x32xf32>
    %36 = vector.broadcast %4 : vector<16x1xf32> to vector<16x32xf32>
    %37 = arith.addf %35, %36 : vector<16x32xf32>
    %c0_17 = arith.constant 0 : index
    %c0_18 = arith.constant 0 : index
    %38 = vector.load %arg9[%c0_17, %c0_18] : memref<16x1xf32, #tpu.memory_space<vmem>>, vector<16x1xf32>
    %c0_19 = arith.constant 0 : index
    %c0_20 = arith.constant 0 : index
    %39 = vector.load %arg10[%c0_19, %c0_20] : memref<16x1xf32, #tpu.memory_space<vmem>>, vector<16x1xf32>
    %cst_21 = arith.constant dense<0.000000e+00> : vector<16x2xf32>
    %40 = tpu.matmul %37, %2, %cst_21 {dimension_numbers = #tpu.dot_dimension_numbers<[1], [0], [0], [1], [0, 0, 1, 1], [], []>} : vector<16x32xf32>, vector<32x2xf32>, vector<16x2xf32> -> vector<16x2xf32>
    %cst_22 = arith.constant dense<0.000000e+00> : vector<2xf32>
    %41 = vector.multi_reduction <add>, %40, %cst_22 [0] : vector<16x2xf32> to vector<2xf32>
    %42 = vector.shape_cast %41 : vector<2xf32> to vector<1x2xf32>
    %43 = arith.mulf %37, %37 : vector<16x32xf32>
    %cst_23 = arith.constant dense<0.000000e+00> : vector<16x2xf32>
    %44 = tpu.matmul %43, %2, %cst_23 {dimension_numbers = #tpu.dot_dimension_numbers<[1], [0], [0], [1], [0, 0, 1, 1], [], []>} : vector<16x32xf32>, vector<32x2xf32>, vector<16x2xf32> -> vector<16x2xf32>
    %cst_24 = arith.constant dense<0.000000e+00> : vector<2xf32>
    %45 = vector.multi_reduction <add>, %44, %cst_24 [0] : vector<16x2xf32> to vector<2xf32>
    %46 = vector.shape_cast %45 : vector<2xf32> to vector<1x2xf32>
    %cst_25 = arith.constant 3.906250e-03 : f32
    %47 = vector.broadcast %cst_25 : f32 to vector<1x2xf32>
    %48 = arith.mulf %42, %47 : vector<1x2xf32>
    %cst_26 = arith.constant 3.906250e-03 : f32
    %49 = vector.broadcast %cst_26 : f32 to vector<1x2xf32>
    %50 = arith.mulf %46, %49 : vector<1x2xf32>
    %51 = arith.mulf %48, %48 : vector<1x2xf32>
    %52 = arith.subf %50, %51 : vector<1x2xf32>
    %cst_27 = arith.constant 9.99999974E-6 : f32
    %53 = vector.broadcast %cst_27 : f32 to vector<1x2xf32>
    %54 = arith.addf %52, %53 : vector<1x2xf32>
    %55 = math.rsqrt %54 : vector<1x2xf32>
    %cst_28 = arith.constant dense<0.000000e+00> : vector<1x32xf32>
    %56 = tpu.matmul %48, %3, %cst_28 {dimension_numbers = #tpu.dot_dimension_numbers<[1], [0], [0], [1], [0, 0, 1, 1], [], []>} : vector<1x2xf32>, vector<2x32xf32>, vector<1x32xf32> -> vector<1x32xf32>
    %cst_29 = arith.constant dense<0.000000e+00> : vector<1x32xf32>
    %57 = tpu.matmul %55, %3, %cst_29 {dimension_numbers = #tpu.dot_dimension_numbers<[1], [0], [0], [1], [0, 0, 1, 1], [], []>} : vector<1x2xf32>, vector<2x32xf32>, vector<1x32xf32> -> vector<1x32xf32>
    %58 = vector.broadcast %56 : vector<1x32xf32> to vector<16x32xf32>
    %59 = arith.subf %37, %58 : vector<16x32xf32>
    %60 = vector.broadcast %57 : vector<1x32xf32> to vector<16x32xf32>
    %61 = arith.mulf %59, %60 : vector<16x32xf32>
    %62 = vector.broadcast %38 : vector<16x1xf32> to vector<16x32xf32>
    %63 = arith.mulf %61, %62 : vector<16x32xf32>
    %64 = vector.broadcast %39 : vector<16x1xf32> to vector<16x32xf32>
    %65 = arith.addf %63, %64 : vector<16x32xf32>
    %66 = math.exp %65 : vector<16x32xf32>
    %cst_30 = arith.constant 1.000000e+00 : f32
    %67 = vector.broadcast %cst_30 : f32 to vector<16x32xf32>
    %68 = arith.addf %67, %66 : vector<16x32xf32>
    %69 = arith.mulf %68, %68 : vector<16x32xf32>
    %cst_31 = arith.constant 1.000000e+00 : f32
    %70 = vector.broadcast %cst_31 : f32 to vector<16x32xf32>
    %71 = arith.addf %69, %70 : vector<16x32xf32>
    %cst_32 = arith.constant 2.000000e+00 : f32
    %72 = vector.broadcast %cst_32 : f32 to vector<16x32xf32>
    %73 = arith.divf %72, %71 : vector<16x32xf32>
    %cst_33 = arith.constant 1.000000e+00 : f32
    %74 = vector.broadcast %cst_33 : f32 to vector<16x32xf32>
    %75 = arith.subf %74, %73 : vector<16x32xf32>
    %76 = arith.mulf %65, %75 : vector<16x32xf32>
    %c0_34 = arith.constant 0 : index
    %c0_35 = arith.constant 0 : index
    %77 = vector.load %arg5[%c0_34, %c0_35] : memref<16x32xf32, #tpu.memory_space<vmem>>, vector<16x32xf32>
    %78 = arith.mulf %77, %76 : vector<16x32xf32>
    %c0_36 = arith.constant 0 : index
    %c0_37 = arith.constant 0 : index
    %79 = vector.load %arg6[%c0_36, %c0_37] : memref<16x32xf32, #tpu.memory_space<vmem>>, vector<16x32xf32>
    %80 = arith.addf %78, %79 : vector<16x32xf32>
    %c0_38 = arith.constant 0 : index
    %c0_39 = arith.constant 0 : index
    %81 = vector.load %arg12[%c0_38, %c0_39] : memref<16x1xf32, #tpu.memory_space<vmem>>, vector<16x1xf32>
    %cst_40 = arith.constant 0.000000e+00 : f32
    %82 = vector.broadcast %cst_40 : f32 to vector<16x1xf32>
    %83 = vector.extract_strided_slice %80 {offsets = [0, 0], sizes = [16, 31], strides = [1, 1]} : vector<16x32xf32> to vector<16x31xf32>
    %84 = tpu.concatenate %82, %83 in 1 : vector<16x1xf32>, vector<16x31xf32> -> vector<16x32xf32>
    %c-1_i32_41 = arith.constant -1 : i32
    %85 = vector.broadcast %c-1_i32_41 : i32 to vector<1x32xi32>
    %86 = arith.addi %1, %85 : vector<1x32xi32>
    %c0_i32_42 = arith.constant 0 : i32
    %87 = vector.broadcast %c0_i32_42 : i32 to vector<1x32xi32>
    %88 = arith.cmpi sge, %86, %87 : vector<1x32xi32>
    %c16_i32_43 = arith.constant 16 : i32
    %89 = vector.broadcast %c16_i32_43 : i32 to vector<1x32xi32>
    %90 = arith.cmpi slt, %86, %89 : vector<1x32xi32>
    %91 = arith.andi %88, %90 : vector<1x32xi1>
    %cst_44 = arith.constant 0.000000e+00 : f32
    %92 = vector.shape_cast %91 : vector<1x32xi1> to vector<1x32xi1>
    %93 = vector.broadcast %92 : vector<1x32xi1> to vector<16x32xi1>
    %94 = vector.broadcast %cst_44 : f32 to vector<16x32xf32>
    %95 = arith.select %93, %84, %94 : vector<16x32xi1>, vector<16x32xf32>
    %cst_45 = arith.constant 0.000000e+00 : f32
    %96 = vector.broadcast %cst_45 : f32 to vector<16x1xf32>
    %97 = vector.extract_strided_slice %80 {offsets = [0, 1], sizes = [16, 31], strides = [1, 1]} : vector<16x32xf32> to vector<16x31xf32>
    %98 = tpu.concatenate %97, %96 in 1 : vector<16x31xf32>, vector<16x1xf32> -> vector<16x32xf32>
    %c1_i32_46 = arith.constant 1 : i32
    %99 = vector.broadcast %c1_i32_46 : i32 to vector<1x32xi32>
    %100 = arith.addi %1, %99 : vector<1x32xi32>
    %c0_i32_47 = arith.constant 0 : i32
    %101 = vector.broadcast %c0_i32_47 : i32 to vector<1x32xi32>
    %102 = arith.cmpi sge, %100, %101 : vector<1x32xi32>
    %c16_i32_48 = arith.constant 16 : i32
    %103 = vector.broadcast %c16_i32_48 : i32 to vector<1x32xi32>
    %104 = arith.cmpi slt, %100, %103 : vector<1x32xi32>
    %105 = arith.andi %102, %104 : vector<1x32xi1>
    %cst_49 = arith.constant 0.000000e+00 : f32
    %106 = vector.shape_cast %105 : vector<1x32xi1> to vector<1x32xi1>
    %107 = vector.broadcast %106 : vector<1x32xi1> to vector<16x32xi1>
    %108 = vector.broadcast %cst_49 : f32 to vector<16x32xf32>
    %109 = arith.select %107, %98, %108 : vector<16x32xi1>, vector<16x32xf32>
    %110 = tpu.concatenate %95, %80, %109 in 0 : vector<16x32xf32>, vector<16x32xf32>, vector<16x32xf32> -> vector<48x32xf32>
    %c0_50 = arith.constant 0 : index
    %c0_51 = arith.constant 0 : index
    %111 = vector.load %arg11[%c0_50, %c0_51] : memref<16x48xf32, #tpu.memory_space<vmem>>, vector<16x48xf32>
    %cst_52 = arith.constant dense<0.000000e+00> : vector<16x32xf32>
    %112 = tpu.matmul %111, %110, %cst_52 {dimension_numbers = #tpu.dot_dimension_numbers<[1], [0], [0], [1], [0, 0, 1, 1], [], []>} : vector<16x48xf32>, vector<48x32xf32>, vector<16x32xf32> -> vector<16x32xf32>
    %113 = vector.broadcast %81 : vector<16x1xf32> to vector<16x32xf32>
    %114 = arith.addf %112, %113 : vector<16x32xf32>
    %c0_53 = arith.constant 0 : index
    %c0_54 = arith.constant 0 : index
    %115 = vector.load %arg13[%c0_53, %c0_54] : memref<16x1xf32, #tpu.memory_space<vmem>>, vector<16x1xf32>
    %c0_55 = arith.constant 0 : index
    %c0_56 = arith.constant 0 : index
    %116 = vector.load %arg14[%c0_55, %c0_56] : memref<16x1xf32, #tpu.memory_space<vmem>>, vector<16x1xf32>
    %cst_57 = arith.constant dense<0.000000e+00> : vector<16x2xf32>
    %117 = tpu.matmul %114, %2, %cst_57 {dimension_numbers = #tpu.dot_dimension_numbers<[1], [0], [0], [1], [0, 0, 1, 1], [], []>} : vector<16x32xf32>, vector<32x2xf32>, vector<16x2xf32> -> vector<16x2xf32>
    %cst_58 = arith.constant dense<0.000000e+00> : vector<2xf32>
    %118 = vector.multi_reduction <add>, %117, %cst_58 [0] : vector<16x2xf32> to vector<2xf32>
    %119 = vector.shape_cast %118 : vector<2xf32> to vector<1x2xf32>
    %120 = arith.mulf %114, %114 : vector<16x32xf32>
    %cst_59 = arith.constant dense<0.000000e+00> : vector<16x2xf32>
    %121 = tpu.matmul %120, %2, %cst_59 {dimension_numbers = #tpu.dot_dimension_numbers<[1], [0], [0], [1], [0, 0, 1, 1], [], []>} : vector<16x32xf32>, vector<32x2xf32>, vector<16x2xf32> -> vector<16x2xf32>
    %cst_60 = arith.constant dense<0.000000e+00> : vector<2xf32>
    %122 = vector.multi_reduction <add>, %121, %cst_60 [0] : vector<16x2xf32> to vector<2xf32>
    %123 = vector.shape_cast %122 : vector<2xf32> to vector<1x2xf32>
    %cst_61 = arith.constant 3.906250e-03 : f32
    %124 = vector.broadcast %cst_61 : f32 to vector<1x2xf32>
    %125 = arith.mulf %119, %124 : vector<1x2xf32>
    %cst_62 = arith.constant 3.906250e-03 : f32
    %126 = vector.broadcast %cst_62 : f32 to vector<1x2xf32>
    %127 = arith.mulf %123, %126 : vector<1x2xf32>
    %128 = arith.mulf %125, %125 : vector<1x2xf32>
    %129 = arith.subf %127, %128 : vector<1x2xf32>
    %cst_63 = arith.constant 9.99999974E-6 : f32
    %130 = vector.broadcast %cst_63 : f32 to vector<1x2xf32>
    %131 = arith.addf %129, %130 : vector<1x2xf32>
    %132 = math.rsqrt %131 : vector<1x2xf32>
    %cst_64 = arith.constant dense<0.000000e+00> : vector<1x32xf32>
    %133 = tpu.matmul %125, %3, %cst_64 {dimension_numbers = #tpu.dot_dimension_numbers<[1], [0], [0], [1], [0, 0, 1, 1], [], []>} : vector<1x2xf32>, vector<2x32xf32>, vector<1x32xf32> -> vector<1x32xf32>
    %cst_65 = arith.constant dense<0.000000e+00> : vector<1x32xf32>
    %134 = tpu.matmul %132, %3, %cst_65 {dimension_numbers = #tpu.dot_dimension_numbers<[1], [0], [0], [1], [0, 0, 1, 1], [], []>} : vector<1x2xf32>, vector<2x32xf32>, vector<1x32xf32> -> vector<1x32xf32>
    %135 = vector.broadcast %133 : vector<1x32xf32> to vector<16x32xf32>
    %136 = arith.subf %114, %135 : vector<16x32xf32>
    %137 = vector.broadcast %134 : vector<1x32xf32> to vector<16x32xf32>
    %138 = arith.mulf %136, %137 : vector<16x32xf32>
    %139 = vector.broadcast %115 : vector<16x1xf32> to vector<16x32xf32>
    %140 = arith.mulf %138, %139 : vector<16x32xf32>
    %141 = vector.broadcast %116 : vector<16x1xf32> to vector<16x32xf32>
    %142 = arith.addf %140, %141 : vector<16x32xf32>
    %143 = math.exp %142 : vector<16x32xf32>
    %cst_66 = arith.constant 1.000000e+00 : f32
    %144 = vector.broadcast %cst_66 : f32 to vector<16x32xf32>
    %145 = arith.addf %144, %143 : vector<16x32xf32>
    %146 = arith.mulf %145, %145 : vector<16x32xf32>
    %cst_67 = arith.constant 1.000000e+00 : f32
    %147 = vector.broadcast %cst_67 : f32 to vector<16x32xf32>
    %148 = arith.addf %146, %147 : vector<16x32xf32>
    %cst_68 = arith.constant 2.000000e+00 : f32
    %149 = vector.broadcast %cst_68 : f32 to vector<16x32xf32>
    %150 = arith.divf %149, %148 : vector<16x32xf32>
    %cst_69 = arith.constant 1.000000e+00 : f32
    %151 = vector.broadcast %cst_69 : f32 to vector<16x32xf32>
    %152 = arith.subf %151, %150 : vector<16x32xf32>
    %153 = arith.mulf %142, %152 : vector<16x32xf32>
    %c0_70 = arith.constant 0 : index
    %c0_71 = arith.constant 0 : index
    %154 = vector.load %arg15[%c0_70, %c0_71] : memref<16x8xf32, #tpu.memory_space<vmem>>, vector<16x8xf32>
    %cst_72 = arith.constant dense<0.000000e+00> : vector<16x32xf32>
    %155 = tpu.matmul %154, %0, %cst_72 {dimension_numbers = #tpu.dot_dimension_numbers<[1], [0], [0], [1], [0, 0, 1, 1], [], []>} : vector<16x8xf32>, vector<8x32xf32>, vector<16x32xf32> -> vector<16x32xf32>
    %c0_73 = arith.constant 0 : index
    %c0_74 = arith.constant 0 : index
    %156 = vector.load %arg16[%c0_73, %c0_74] : memref<16x1xf32, #tpu.memory_space<vmem>>, vector<16x1xf32>
    %157 = vector.broadcast %156 : vector<16x1xf32> to vector<16x32xf32>
    %158 = arith.addf %155, %157 : vector<16x32xf32>
    %159 = arith.addf %153, %158 : vector<16x32xf32>
    %c0_75 = arith.constant 0 : index
    %c0_76 = arith.constant 0 : index
    %160 = vector.load %arg17[%c0_75, %c0_76] : memref<16x32xf32, #tpu.memory_space<vmem>>, vector<16x32xf32>
    tpu.vector_store %arg17[%c0_75, %c0_76], %159 {strides = array<i32>} : memref<16x32xf32, #tpu.memory_space<vmem>>, vector<16x32xf32>,
    return
  }
  func.func @transform_0(%arg0: i32) -> (i32, i32) {
    %c0_i32 = arith.constant 0 : i32
    %c0_i32_0 = arith.constant 0 : i32
    return %c0_i32, %arg0 : i32, i32
  }
  func.func @transform_1(%arg0: i32) -> (i32, i32) {
    %c0_i32 = arith.constant 0 : i32
    %c0_i32_0 = arith.constant 0 : i32
    return %c0_i32, %arg0 : i32, i32
  }
  func.func @transform_2(%arg0: i32) -> (i32, i32) {
    %c0_i32 = arith.constant 0 : i32
    %c0_i32_0 = arith.constant 0 : i32
    %c0_i32_1 = arith.constant 0 : i32
    return %c0_i32, %c0_i32_0 : i32, i32
  }
  func.func @transform_3(%arg0: i32) -> (i32, i32) {
    %c0_i32 = arith.constant 0 : i32
    %c0_i32_0 = arith.constant 0 : i32
    %c0_i32_1 = arith.constant 0 : i32
    return %c0_i32, %c0_i32_0 : i32, i32
  }
  func.func @transform_4(%arg0: i32) -> (i32, i32) {
    %c0_i32 = arith.constant 0 : i32
    %c0_i32_0 = arith.constant 0 : i32
    return %c0_i32, %arg0 : i32, i32
  }
  func.func @transform_5(%arg0: i32) -> (i32, i32) {
    %c0_i32 = arith.constant 0 : i32
    %c0_i32_0 = arith.constant 0 : i32
    return %c0_i32, %arg0 : i32, i32
  }
  func.func @transform_6(%arg0: i32) -> (i32, i32) {
    %c0_i32 = arith.constant 0 : i32
    %c0_i32_0 = arith.constant 0 : i32
    %c0_i32_1 = arith.constant 0 : i32
    return %c0_i32, %c0_i32_0 : i32, i32
  }
  func.func @transform_7(%arg0: i32) -> (i32, i32) {
    %c0_i32 = arith.constant 0 : i32
    %c0_i32_0 = arith.constant 0 : i32
    %c0_i32_1 = arith.constant 0 : i32
    return %c0_i32, %c0_i32_0 : i32, i32
  }
  func.func @transform_8(%arg0: i32) -> (i32, i32) {
    %c0_i32 = arith.constant 0 : i32
    %c0_i32_0 = arith.constant 0 : i32
    %c0_i32_1 = arith.constant 0 : i32
    return %c0_i32, %c0_i32_0 : i32, i32
  }
  func.func @transform_9(%arg0: i32) -> (i32, i32) {
    %c0_i32 = arith.constant 0 : i32
    %c0_i32_0 = arith.constant 0 : i32
    %c0_i32_1 = arith.constant 0 : i32
    return %c0_i32, %c0_i32_0 : i32, i32
  }
  func.func @transform_10(%arg0: i32) -> (i32, i32) {
    %c0_i32 = arith.constant 0 : i32
    %c0_i32_0 = arith.constant 0 : i32
    %c0_i32_1 = arith.constant 0 : i32
    return %c0_i32, %c0_i32_0 : i32, i32
  }
  func.func @transform_11(%arg0: i32) -> (i32, i32) {
    %c0_i32 = arith.constant 0 : i32
    %c0_i32_0 = arith.constant 0 : i32
    %c0_i32_1 = arith.constant 0 : i32
    return %c0_i32, %c0_i32_0 : i32, i32
  }
  func.func @transform_12(%arg0: i32) -> (i32, i32) {
    %c0_i32 = arith.constant 0 : i32
    %c0_i32_0 = arith.constant 0 : i32
    %c0_i32_1 = arith.constant 0 : i32
    return %c0_i32, %c0_i32_0 : i32, i32
  }
  func.func @transform_13(%arg0: i32) -> (i32, i32) {
    %c0_i32 = arith.constant 0 : i32
    %c0_i32_0 = arith.constant 0 : i32
    %c0_i32_1 = arith.constant 0 : i32
    return %c0_i32, %c0_i32_0 : i32, i32
  }
  func.func @transform_14(%arg0: i32) -> (i32, i32) {
    %c0_i32 = arith.constant 0 : i32
    %c0_i32_0 = arith.constant 0 : i32
    %c0_i32_1 = arith.constant 0 : i32
    return %c0_i32, %c0_i32_0 : i32, i32
  }
  func.func @transform_15(%arg0: i32) -> (i32, i32) {
    %c0_i32 = arith.constant 0 : i32
    %c0_i32_0 = arith.constant 0 : i32
    %c0_i32_1 = arith.constant 0 : i32
    return %c0_i32, %c0_i32_0 : i32, i32
  }
  func.func @transform_16(%arg0: i32) -> (i32, i32) {
    %c0_i32 = arith.constant 0 : i32
    %c0_i32_0 = arith.constant 0 : i32
    return %c0_i32, %arg0 : i32, i32
  }
}

</mosaic_0001>

<bundles_post_ra>
// kernel: tpu_custom_call.1
= control target key start
LH: loop header
LB: loop body
LE: loop exit
PB: predicated region body
PF: predicated region fallthrough
CT: control target
= control target key end

     0   :  { %s1849_s0 = inlined_call_operand.vmem [shape: f32[8,32], index: 0, kind: input, shape index: {}]   ;;  %s1850_s1 = inlined_call_operand.vmem [shape: s32[1,32], index: 1, kind: input, shape index: {}]   ;;  %s1851_s2 = inlined_call_operand.vmem [shape: f32[32,2], index: 2, kind: input, shape index: {}]   ;;  %s1852_s3 = inlined_call_operand.vmem [shape: f32[2,32], index: 3, kind: input, shape index: {}]   ;;  %s1853_s4 = inlined_call_operand.vmem [shape: f32[16,32], index: 4, kind: input, shape index: {}]   ;;  %s1854_s5 = inlined_call_operand.vmem [shape: f32[16,32], index: 5, kind: input, shape index: {}]   ;;  %s1855_s6 = inlined_call_operand.vmem [shape: f32[16,24], index: 6, kind: input, shape index: {}]   ;;  %s1856_s7 = inlined_call_operand.vmem [shape: f32[16,1], index: 7, kind: input, shape index: {}]   ;;  %s1857_s8 = inlined_call_operand.vmem [shape: f32[16,1], index: 8, kind: input, shape index: {}]   ;;  %s1858_s9 = inlined_call_operand.vmem [shape: f32[16,1], index: 9, kind: input, shape index: {}]   ;;  %s1859_s10 = inlined_call_operand.vmem [shape: f32[16,48], index: 10, kind: input, shape index: {}]   ;;  %s1860_s11 = inlined_call_operand.vmem [shape: f32[16,1], index: 11, kind: input, shape index: {}]   ;;  %s1861_s12 = inlined_call_operand.vmem [shape: f32[16,1], index: 12, kind: input, shape index: {}]   ;;  %s1862_s13 = inlined_call_operand.vmem [shape: f32[16,1], index: 13, kind: input, shape index: {}]   ;;  %s1863_s14 = inlined_call_operand.vmem [shape: f32[16,8], index: 14, kind: input, shape index: {}]   ;;  %s1864_s15 = inlined_call_operand.vmem [shape: f32[16,1], index: 15, kind: input, shape index: {}]   ;;  %s1865_s16 = inlined_call_operand.hbm [shape: f32[16,32], index: 16, kind: output, shape index: {}]  }
   0x1   :  { %1866 = sst [smem:[#allocation5_spill]] %s1849_s0 }
   0x2   :  { %s1867_s23 = sld [smem:[#allocation5_spill]]  ;;  %s1510_s24 = smov 1   ;;  %v96_v1 = vld [vmem:[%s1855_s6] sm:$0xff]  ;;  %vm108_vm0 = vcmask 195584   ;;  %v1511_v2 = vmov 0  }
   0x3   :  { %1454 = vset.pattern.permute.xlu1 %v1511_v2  ;;  %v61_v3 = vld [vmem:[%s1856_s7] sm:$0xff]  ;;  %1455 = vset.pattern.permute.xlu0 %v1511_v2 }
   0x4   :  { %1304 = vmatprep.mubr.msk.f32.mxu0 %vm108_vm0, %v96_v1  ;;  %100 = vperm.xlu1 %1454, %v61_v3  }
   0x8   :  { %v1607_v0 = vld [vmem:[%s1867_s23] sm:$0xff] }
   0x9   :  { %64 = vrot.lane.b32.xlu0 %v1607_v0, %s1510_s24 }
   0xa   :  { %21 = vsyncpa [#allocation3], 0  ;;  %v62_v4 = vld [vmem:[%s1856_s7 + $0x8] sm:$0xff]  ;;  %s1512_s0 = smov 127   ;;  %v56_v6 = vld [vmem:[%s1851_s2] sm:$0xff]  ;;  %v74_v12 = vlaneseq  ;;  %vm67_vm7 = vcmask 7168  }
   0xb   :  { %105 = vperm.xlu1 %1454, %v62_v4   ;;  %v191_v5 = vld [vmem:[%s1857_s8 + $0x8] sm:$0xff]  ;;  %v192_v9 = vld [vmem:[%s1858_s9] sm:$0xff]  ;;  %vm1513_vm9 = vmmov 1   ;;  %vm83_vm11 = vcmask 252928   ;;  %v58_v28 = vld [vmem:[%s1851_s2 + $0x10] sm:$0xff]  ;;  %vm194_vm13 = vcmask 261120  }
   0xc   :  { %v57_v7 = vld [vmem:[%s1851_s2 + $0x8] sm:$0xff]  ;;  %v55_v10 = vld [vmem:[%s1850_s1] sm:$0x1]  ;;  %v75_v13 = vshrl.u32 %v74_v12, 7  ;;  %v59_v29 = vld [vmem:[%s1851_s2 + $0x18] sm:$0xff]  ;;  %v1514_v39 = vmov 0.0  }
   0xd   :  { %80 = vrot.lane.b32.xlu0 %v1607_v0, %s1512_s0  ;;  %v1632_v8 = vpack.c.bf16 %v57_v7, %v56_v6  ;;  %v69_v11 = vadd.s32 4294967295, %v55_v10  ;;  %v85_v14 = vadd.s32 1, %v55_v10  ;;  %v97_v27 = vld [vmem:[%s1855_s6 + $0x8] sm:$0xff]  ;;  %v1675_v30 = vpack.c.bf16 %v59_v29, %v58_v28  ;;  %v1699_v40 = vld [vmem:[%s1852_s3] sm:$0x3] }
   0xe   :  { %v1642_v15 = vsub.s32 0, %v75_v13  ;;  %vm387_vm14 = vcmask 1041408   ;;  %vm1515_vm15 = vmmov 0   ;;  %v190_v41 = vld [vmem:[%s1857_s8] sm:$0xff]  ;;  %v193_v42 = vld [vmem:[%s1858_s9 + $0x8] sm:$0xff] }
   0xf   :  { %553 = vperm.xlu1 %1454, %v191_v5   ;;  %1398 = vmatprep.subr.bf16.mxu1 %v1632_v8  ;;  %vm70_vm1 = vcmp.ge.s32.totalorder %v69_v11, 0  ;;  %vm71_vm2 = vcmp.lt.s32.totalorder %v69_v11, 16  ;;  %vm86_vm4 = vcmp.ge.s32.totalorder %v85_v14, 0  ;;  %vm87_vm5 = vcmp.lt.s32.totalorder %v85_v14, 16 }
  0x10   :  { %1400 = vmatpush3.bf16.msra.mxu1 %v1632_v8  ;;  %vm72_vm3 = vmand %vm70_vm1, %vm71_vm2  ;;  %vm632_vm1 = vcmask 392192  }
  0x11   :  { %v73_v16 = vsel %vm72_vm3, 1, %v1511_v2  ;;  %vm88_vm6 = vmand %vm86_vm4, %vm87_vm5  ;;  %1402 = vmatprep.subr.bf16.mxu1 %v1675_v30  ;;  %548 = vperm.xlu0 %1455, %v190_v41   ;;  %vm1120_vm4 = vcmask 64512  }
  0x12   :  { %v77_v17 = vrot.slane %v73_v16, %v1642_v15  ;;  %v89_v18 = vsel %vm88_vm6, 1, %v1511_v2 }
  0x13   :  { %560 = vperm.xlu1 %1454, %v192_v9   ;;  %v93_v20 = vrot.slane %v89_v18, %v1642_v15 }
  0x14   :  { %vm1645_vm8 = vcmp.eq.s32.totalorder %v77_v17, 1  ;;  %1404 = vmatpush3.bf16.msra.mxu1 %v1675_v30 }
  0x15   :  { %vm1392_vm10 = vmpackc.low %vm1513_vm9, %vm1645_vm8  ;;  %vm1654_vm12 = vcmp.eq.s32.totalorder %v93_v20, 1  ;;  %1329 = vmatprep.subr.mxu1 %v1514_v39  ;;  %565 = vperm.xlu0 %1455, %v193_v42  }
  0x16   :  { %vm1414_vm2 = vmpackc.low %vm1645_vm8, %vm1645_vm8 }
  0x17   :  { %vm1424_vm3 = vmpackc.low %vm1654_vm12, %vm1654_vm12 }
  0x7b   :  { %v65_v21 = vpop.permute.xlu0 %64 }
  0x7c   :  { %v68_v22 = vsel %vm67_vm7, 0.0, %v65_v21 }
  0x7d   :  { %v1391_v23 = vpack.c.bf16 %v1607_v0, %v68_v22 }
  0x7f   :  { %1393 = vmatprep.subr.msk.bf16.mxu0 %vm1392_vm10, %v1391_v23  ;;  %v81_v25 = vpop.permute.xlu0 %80 }
  0x80   :  { %1396 = vmatpush3.bf16.msk.msra.mxu0 %vm1392_vm10, %v1391_v23  ;;  %v84_v26 = vsel %vm83_vm11, %v81_v25, 0.0 }
  0x81   :  { %1302 = vmatprep.subr.msk.mxu0 %vm1654_vm12, %v84_v26 }
  0x83   :  { %v101_v31 = vpop.permute.xlu1 %100 }
  0x84   :  { %1303 = vmatpush3.msk.msra.mxu0 %vm1654_vm12, %v84_v26 }
  0x85   :  { %1305 = vmatmul.mubr.msk.f32.vlgmr.msra.gmra.mrb[0].mxu0 %vm108_vm0, %v97_v27  ;;  %1406 = vmatprep.subr.bf16.mxu0 %v1632_v8  ;;  %vm276_vm0 = vcmask 15360  }
  0x86   :  { %1408 = vmatpush3.bf16.msra.mxu0 %v1632_v8 }
  0x87   :  { %1410 = vmatprep.subr.bf16.mxu0 %v1675_v30 }
  0x8a   :  { %1412 = vmatpush3.bf16.msra.mxu0 %v1675_v30  ;;  %v106_v32 = vpop.permute.xlu1 %105 }
  0x8e   :  { %v554_v12 = vpop.permute.xlu1 %553 }
  0x90   :  { %v549_v13 = vpop.permute.xlu0 %548 }
  0x92   :  { %v561_v26 = vpop.permute.xlu1 %560 }
  0x94   :  { %v566_v27 = vpop.permute.xlu0 %565 }
 0x158   :  { %v1306_v33 = vpop.f32.mrb[0].mxu0 }
 0x159   :  { %v1681_v34 = vadd.f32 %v1306_v33, %v106_v32  ;;  %v181_v35 = vpop.f32.mrb[1].mxu0 }
 0x15a   :  { %v1683_v36 = vadd.f32 %v181_v35, %v101_v31 }
 0x15b   :  { %v287_v38 = vmul.f32 %v1681_v34, %v1681_v34 }
 0x15c   :  { %v286_v37 = vmul.f32 %v1683_v36, %v1683_v36  ;;  %1315 = vmatprep.mubr.msk.f32.mxu1 %vm194_vm13, %v1683_v36 }
 0x15d   :  { %1316 = vmatmul.mubr.msk.f32.vlgmr.msra.gmra.mrb[0].mxu1 %vm194_vm13, %v1681_v34 }
 0x15e   :  { %1326 = vmatprep.mubr.msk.f32.mxu0 %vm194_vm13, %v286_v37  ;;  %1330 = vmatpush3.msk.msra.mxu1 %vm387_vm14, %v1699_v40 }
 0x15f   :  { %1327 = vmatmul.mubr.msk.f32.vlgmr.msra.gmra.mrb[2].mxu0 %vm194_vm13, %v287_v38  ;;  %1331 = vmatprep.mubr.msk.f32.mxu1 %vm1515_vm15, %v1514_v39 }
 0x160   :  { %1334 = vmatprep.subr.mxu1 %v1514_v39 }
 0x230   :  { %v1317_v43 = vpop.f32.mrb[0].mxu1 }
 0x231   :  { %v278_v44 = vsel %vm276_vm0, %v1317_v43, 0.0  ;;  %v267_v45 = vpop.f32.mrb[1].mxu1 }
 0x232   :  { %v277_v46 = vsel %vm276_vm0, %v267_v45, 0.0  ;;  %v1328_v47 = vpop.f32.mrb[2].mxu0 }
 0x233   :  { %v279_v48 = vadd.f32 %v278_v44, %v277_v46  ;;  %v370_v49 = vsel %vm276_vm0, %v1328_v47, 0.0  ;;  %v360_v50 = vpop.f32.mrb[3].mxu0 }
 0x234   :  { %v369_v51 = vsel %vm276_vm0, %v360_v50, 0.0 }
 0x235   :  { %v280_v52 = vrot.slane %v279_v48, 4  ;;  %v371_v53 = vadd.f32 %v370_v49, %v369_v51  ;;  %v588_v49 = vld [vmem:[%s1853_s4] sm:$0xff]  ;;  %v589_v51 = vld [vmem:[%s1853_s4 + $0x8] sm:$0xff] }
 0x237   :  { %v281_v54 = vadd.f32 %v280_v52, %v279_v48  ;;  %v372_v55 = vrot.slane %v371_v53, 4 }
 0x239   :  { %v282_v56 = vrot.slane %v281_v54, 2  ;;  %v373_v57 = vadd.f32 %v372_v55, %v371_v53  ;;  %v592_v53 = vld [vmem:[%s1854_s5] sm:$0xff] }
 0x23b   :  { %v283_v58 = vadd.f32 %v282_v56, %v281_v54  ;;  %v374_v59 = vrot.slane %v373_v57, 2  ;;  %v593_v54 = vld [vmem:[%s1854_s5 + $0x8] sm:$0xff] }
 0x23d   :  { %v284_v60 = vrot.slane %v283_v58, 1  ;;  %v375_v61 = vadd.f32 %v374_v59, %v373_v57 }
 0x23f   :  { %v285_v62 = vadd.f32 %v284_v60, %v283_v58  ;;  %v376_v63 = vrot.slane %v375_v61, 1 }
 0x241   :  { %v378_v1 = vmul.f32 0.00390625, %v285_v62  ;;  %v377_v2 = vadd.f32 %v376_v63, %v375_v61  ;;  %v597_v61 = vld [vmem:[%s1860_s11 + $0x8] sm:$0xff]  ;;  %v596_v62 = vld [vmem:[%s1860_s11] sm:$0xff] }
 0x242   :  { %v620_v63 = vld [vmem:[%s1859_s10] sm:$0xff] }
 0x243   :  { %v380_v3 = vmul.f32 %v378_v1, %v378_v1  ;;  %v379_v4 = vmul.f32 0.00390625, %v377_v2  ;;  %1332 = vmatmul.mubr.msk.f32.vlgmr.msra.gmra.mrb[2].mxu1 %vm276_vm0, %v378_v1  ;;  %1351 = vmatprep.mubr.msk.f32.mxu0 %vm632_vm1, %v620_v63  ;;  %v715_v1 = vld [vmem:[%s1861_s12 + $0x8] sm:$0xff]  ;;  %v714_v2 = vld [vmem:[%s1861_s12] sm:$0xff] }
 0x244   :  { %1335 = vmatpush3.msk.msra.mxu1 %vm387_vm14, %v1699_v40  ;;  %1336 = vmatprep.mubr.msk.f32.mxu1 %vm1515_vm15, %v1514_v39 }
 0x245   :  { %v381_v5 = vsub.f32 %v379_v4, %v380_v3  ;;  %1430 = vmatprep.subr.bf16.mxu1 %v1632_v8  ;;  %v717_v3 = vld [vmem:[%s1862_s13 + $0x8] sm:$0xff]  ;;  %v716_v4 = vld [vmem:[%s1862_s13] sm:$0xff] }
 0x247   :  { %v382_v6 = vadd.f32 1e-05, %v381_v5  ;;  %v1109_v5 = vld [vmem:[%s1864_s15 + $0x8] sm:$0xff] }
 0x249   :  { %1466 = vrsqrt.f32 %v382_v6  ;;  %v1108_v6 = vld [vmem:[%s1864_s15] sm:$0xff] }
 0x253   :  { %v1467_v7 = vpop.eup %1466 }
 0x254   :  { %1337 = vmatmul.mubr.msk.f32.vlgmr.msra.gmra.mrb[4].mxu1 %vm276_vm0, %v1467_v7 }
 0x255   :  { %1432 = vmatpush3.bf16.msra.mxu1 %v1632_v8 }
 0x256   :  { %1434 = vmatprep.subr.bf16.mxu1 %v1675_v30 }
 0x259   :  { %1436 = vmatpush3.bf16.msra.mxu1 %v1675_v30 }
 0x25a   :  { %1438 = vmatprep.subr.bf16.mxu1 %v1632_v8 }
 0x316   :  { %v457_v9 = vpop.f32.mrb[2].mxu1 }
 0x317   :  { %v1333_v10 = vpop.f32.mrb[3].mxu1  ;;  %v537_v11 = vrot.slane %v457_v9, %v1642_v15 }
 0x319   :  { %v538_v16 = vsub.f32 %v1683_v36, %v537_v11  ;;  %v539_v17 = vsub.f32 %v1681_v34, %v537_v11 }
 0x327   :  { %v530_v14 = vpop.f32.mrb[4].mxu1 }
 0x328   :  { %v543_v18 = vrot.slane %v530_v14, %v1642_v15  ;;  %v1338_v20 = vpop.f32.mrb[5].mxu1 }
 0x32a   :  { %v544_v21 = vmul.f32 %v543_v18, %v538_v16  ;;  %v545_v22 = vmul.f32 %v543_v18, %v539_v17 }
 0x32c   :  { %v556_v23 = vmul.f32 %v549_v13, %v544_v21  ;;  %v557_v25 = vmul.f32 %v554_v12, %v545_v22  ;;  %v621_v21 = vld [vmem:[%s1859_s10 + $0x8] sm:$0xff] }
 0x32e   :  { %v568_v28 = vadd.f32 %v561_v26, %v556_v23  ;;  %v569_v29 = vadd.f32 %v566_v27, %v557_v25 }
 0x330   :  { %v570_v31 = vmul.f32 1.442695, %v568_v28  ;;  %v572_v32 = vmul.f32 1.442695, %v569_v29 }
 0x332   :  { %1468 = vpow2.f32 %v570_v31  ;;  %v1106_v31 = vld [vmem:[%s1863_s14] sm:$0xff] }
 0x333   :  { %1470 = vpow2.f32 %v572_v32 }
 0x33c   :  { %v1469_v33 = vpop.eup %1468 }
 0x33d   :  { %v1471_v35 = vpop.eup %1470  ;;  %v574_v36 = vadd.f32 1.0, %v1469_v33 }
 0x33e   :  { %v575_v37 = vadd.f32 1.0, %v1471_v35 }
 0x33f   :  { %v576_v34 = vmul.f32 %v574_v36, %v574_v36 }
 0x340   :  { %v577_v38 = vmul.f32 %v575_v37, %v575_v37 }
 0x341   :  { %v578_v41 = vadd.f32 1.0, %v576_v34 }
 0x342   :  { %v579_v42 = vadd.f32 1.0, %v577_v38 }
 0x343   :  { %1472 = vrcp.f32 %v578_v41 }
 0x344   :  { %1474 = vrcp.f32 %v579_v42 }
 0x34d   :  { %v1473_v43 = vpop.eup %1472 }
 0x34e   :  { %v1475_v44 = vpop.eup %1474  ;;  %v581_v45 = vmul.f32 2.0, %v1473_v43 }
 0x34f   :  { %v583_v46 = vmul.f32 2.0, %v1475_v44 }
 0x350   :  { %v584_v47 = vsub.f32 1.0, %v581_v45 }
 0x351   :  { %v585_v48 = vsub.f32 1.0, %v583_v46 }
 0x352   :  { %v586_v50 = vmul.f32 %v584_v47, %v568_v28 }
 0x353   :  { %v587_v52 = vmul.f32 %v585_v48, %v569_v29 }
 0x354   :  { %v590_v55 = vmul.f32 %v588_v49, %v586_v50 }
 0x355   :  { %v591_v56 = vmul.f32 %v589_v51, %v587_v52 }
 0x356   :  { %v594_v57 = vadd.f32 %v592_v53, %v590_v55 }
 0x357   :  { %v595_v58 = vadd.f32 %v593_v54, %v591_v56 }
 0x359   :  { %v1461_v59 = vpack.i.bf16 %v595_v58, %v594_v57  ;;  %v1419_v60 = vpack.c.bf16 %v595_v58, %v594_v57 }
 0x35b   :  { %1462 = vrot.lane.b32.xlu0 %v1461_v59, %s1512_s0  ;;  %1457 = vrot.lane.b32.xlu1 %v1461_v59, %s1510_s24 }
 0x35f   :  { %629 = vperm.xlu0 %1455, %v597_v61   ;;  %624 = vperm.xlu1 %1454, %v596_v62  }
 0x363   :  { %1071 = vperm.xlu0 %1455, %v715_v1   ;;  %1066 = vperm.xlu1 %1454, %v714_v2  }
 0x367   :  { %1083 = vperm.xlu0 %1455, %v717_v3   ;;  %1078 = vperm.xlu1 %1454, %v716_v4  }
 0x36b   :  { %1117 = vperm.xlu0 %1455, %v1109_v5   ;;  %1112 = vperm.xlu1 %1454, %v1108_v6  }
 0x3cd   :  { %v1463_v7 = vpop.permute.xlu0 %1462  ;;  %v1458_v9 = vpop.permute.xlu1 %1457 }
 0x3ce   :  { %v1460_v10 = vunpack.i.h.bf16 %v1458_v9  ;;  %v1459_v11 = vunpack.i.l.bf16 %v1458_v9  ;;  %v1465_v12 = vunpack.i.h.bf16 %v1463_v7  ;;  %v1464_v13 = vunpack.i.l.bf16 %v1463_v7 }
 0x3d0   :  { %v607_v14 = vsel %vm67_vm7, 0.0, %v1460_v10  ;;  %v606_v16 = vsel %vm67_vm7, 0.0, %v1459_v11  ;;  %v617_v18 = vsel %vm83_vm11, %v1465_v12, 0.0  ;;  %v616_v20 = vsel %vm83_vm11, %v1464_v13, 0.0 }
 0x3d1   :  { %v1413_v17 = vpack.c.bf16 %v607_v14, %v606_v16  ;;  %v1423_v19 = vpack.c.bf16 %v617_v18, %v616_v20 }
 0x3d3   :  { %1415 = vmatprep.subr.msk.bf16.mxu0 %vm1414_vm2, %v1413_v17 }
 0x3d4   :  { %1418 = vmatpush3.bf16.msk.msra.mxu0 %vm1414_vm2, %v1413_v17 }
 0x3d5   :  { %1420 = vmatprep.subr.bf16.mxu0 %v1419_v60 }
 0x3d8   :  { %1422 = vmatpush3.bf16.msra.mxu0 %v1419_v60 }
 0x3d9   :  { %1425 = vmatprep.subr.msk.bf16.mxu0 %vm1424_vm3, %v1423_v19 }
 0x3dc   :  { %1428 = vmatpush3.bf16.msk.msra.mxu0 %vm1424_vm3, %v1423_v19 }
 0x3dd   :  { %1376 = vmatprep.subr.mxu0 %v1514_v39 }
 0x3de   :  { %v625_v22 = vpop.permute.xlu1 %624  ;;  %v630_v25 = vpop.permute.xlu0 %629 }
 0x3df   :  { %1352 = vmatmul.mubr.msk.f32.vlgmr.msra.gmra.mrb[4].mxu0 %vm632_vm1, %v621_v21 }
 0x3e0   :  { %1377 = vmatpush3.msk.msra.mxu0 %vm387_vm14, %v1699_v40  ;;  %1378 = vmatprep.mubr.msk.f32.mxu0 %vm1515_vm15, %v1514_v39 }
 0x3e1   :  { %1381 = vmatprep.subr.mxu0 %v1514_v39 }
 0x3e2   :  { %v1072_v2 = vpop.permute.xlu0 %1071  ;;  %v1067_v3 = vpop.permute.xlu1 %1066 }
 0x3e6   :  { %v1084_v12 = vpop.permute.xlu0 %1083  ;;  %v1079_v13 = vpop.permute.xlu1 %1078 }
 0x4b2   :  { %v1353_v24 = vpop.f32.mrb[4].mxu0 }
 0x4b3   :  { %v705_v23 = vpop.f32.mrb[5].mxu0  ;;  %v1795_v27 = vadd.f32 %v1353_v24, %v630_v25 }
 0x4b4   :  { %v1793_v26 = vadd.f32 %v705_v23, %v625_v22 }
 0x4b5   :  { %v809_v29 = vmul.f32 %v1795_v27, %v1795_v27 }
 0x4b6   :  { %v808_v28 = vmul.f32 %v1793_v26, %v1793_v26  ;;  %1362 = vmatprep.mubr.msk.f32.mxu1 %vm194_vm13, %v1793_v26 }
 0x4b7   :  { %1363 = vmatmul.mubr.msk.f32.vlgmr.msra.gmra.mrb[6].mxu1 %vm194_vm13, %v1795_v27 }
 0x4b8   :  { %1440 = vmatpush3.bf16.msra.mxu1 %v1632_v8  ;;  %1373 = vmatprep.mubr.msk.f32.mxu1 %vm194_vm13, %v808_v28  ;;  %v1107_v8 = vld [vmem:[%s1863_s14 + $0x8] sm:$0xff]  ;;  %s1516_s14 = smov [#allocation2]  }
 0x4b9   :  { %1442 = vmatprep.subr.bf16.mxu1 %v1675_v30  ;;  %s1211_s22 = sshll.u32 %s1516_s14, 4  ;;  %s1212_s22 = int_to_ptr.vmem [resolvable:$true] %s1211_s22 }
 0x4ba   :  { %s1486_s7 = scalar_lea.vmem %s1212_s22, 256  ;;  %p1491_p1 = scmp.lt.s32.totalorder %s1212_s22, %s1212_s22 }
 0x4bb   :  { %p1487_p0 = scmp.ne.s32.totalorder %s1212_s22, %s1486_s7  ;;  %p1492_p2 = scmp.lt.s32.totalorder %s1486_s7, %s1486_s7 }
 0x4bc   :  { %1444 = vmatpush3.bf16.msra.mxu1 %v1675_v30 }
 0x4bd   :  { %1386 = vmatprep.subr.mxu1 %v1607_v0  ;;  %p1493_p3 = por %p1492_p2, %p1491_p1 }
 0x4bf   :  { %1374 = vmatmul.mubr.msk.f32.vlgmr.msra.gmra.mrb[8].mxu1 %vm194_vm13, %v809_v29  ;;  %p1494_p4 = pnand %p1493_p3, %p1487_p0 }
 0x4c0   :  { %1387 = vmatpush3.msra.mxu1 %v1607_v0  ;;  %1388 = vmatprep.mubr.msk.f32.mxu1 %vm1120_vm4, %v1106_v31 }
 0x4c3   :  { %1389 = vmatmul.mubr.msk.f32.vlgmr.msra.gmra.mrb[10].mxu1 %vm1120_vm4, %v1107_v8  ;;  %v1113_v8 = vpop.permute.xlu1 %1112 }
 0x58a   :  { %v1364_v30 = vpop.f32.mrb[6].mxu1 }
 0x58b   :  { %v800_v32 = vsel %vm276_vm0, %v1364_v30, 0.0  ;;  %v790_v33 = vpop.f32.mrb[7].mxu1 }
 0x58c   :  { %v799_v35 = vsel %vm276_vm0, %v790_v33, 0.0 }
 0x58d   :  { %v801_v36 = vadd.f32 %v800_v32, %v799_v35  ;;  %v1118_v32 = vpop.permute.xlu0 %1117 }
 0x58f   :  { %v802_v37 = vrot.slane %v801_v36, 4 }
 0x591   :  { %v803_v34 = vadd.f32 %v802_v37, %v801_v36 }
 0x592   :  { %v1375_v38 = vpop.f32.mrb[8].mxu1 }
 0x593   :  { %v804_v41 = vrot.slane %v803_v34, 2  ;;  %v892_v42 = vsel %vm276_vm0, %v1375_v38, 0.0  ;;  %v882_v0 = vpop.f32.mrb[9].mxu1 }
 0x594   :  { %v891_v43 = vsel %vm276_vm0, %v882_v0, 0.0 }
 0x595   :  { %v805_v44 = vadd.f32 %v804_v41, %v803_v34  ;;  %v893_v45 = vadd.f32 %v892_v42, %v891_v43 }
 0x596   :  { %v1822_v46 = vpop.f32.mrb[10].mxu1 }
 0x597   :  { %v806_v47 = vrot.slane %v805_v44, 1  ;;  %v894_v48 = vrot.slane %v893_v45, 4  ;;  %v1193_v49 = vpop.f32.mrb[11].mxu1  ;;  %v1199_v36 = vadd.f32 %v1822_v46, %v1118_v32 }
 0x598   :  { %v1194_v33 = vadd.f32 %v1193_v49, %v1113_v8 }
 0x599   :  { %v807_v50 = vadd.f32 %v806_v47, %v805_v44  ;;  %v895_v51 = vadd.f32 %v894_v48, %v893_v45 }
 0x59b   :  { %v900_v52 = vmul.f32 0.00390625, %v807_v50  ;;  %v896_v53 = vrot.slane %v895_v51, 2 }
 0x59d   :  { %v897_v54 = vadd.f32 %v896_v53, %v895_v51  ;;  %1379 = vmatmul.mubr.msk.f32.vlgmr.msra.gmra.mrb[6].mxu0 %vm276_vm0, %v900_v52  ;;  %v902_v57 = vmul.f32 %v900_v52, %v900_v52 }
 0x59e   :  { %1382 = vmatpush3.msk.msra.mxu0 %vm387_vm14, %v1699_v40  ;;  %1383 = vmatprep.mubr.msk.f32.mxu0 %vm1515_vm15, %v1514_v39 }
 0x59f   :  { %v898_v55 = vrot.slane %v897_v54, 1 }
 0x5a1   :  { %v899_v56 = vadd.f32 %v898_v55, %v897_v54 }
 0x5a3   :  { %v901_v58 = vmul.f32 0.00390625, %v899_v56 }
 0x5a5   :  { %v903_v59 = vsub.f32 %v901_v58, %v902_v57 }
 0x5a7   :  { %v904_v60 = vadd.f32 1e-05, %v903_v59 }
 0x5a9   :  { %1476 = vrsqrt.f32 %v904_v60 }
 0x5b3   :  { %v1477_v61 = vpop.eup %1476 }
 0x5b4   :  { %1384 = vmatmul.mubr.msk.f32.vlgmr.msra.gmra.mrb[8].mxu0 %vm276_vm0, %v1477_v61 }
 0x670   :  { %v975_v62 = vpop.f32.mrb[6].mxu0 }
 0x671   :  { %v1380_v63 = vpop.f32.mrb[7].mxu0  ;;  %v1055_v1 = vrot.slane %v975_v62, %v1642_v15 }
 0x673   :  { %v1056_v4 = vsub.f32 %v1793_v26, %v1055_v1  ;;  %v1057_v39 = vsub.f32 %v1795_v27, %v1055_v1 }
 0x687   :  { %v1048_v40 = vpop.f32.mrb[8].mxu0 }
 0x688   :  { %v1061_v5 = vrot.slane %v1048_v40, %v1642_v15  ;;  %v1385_v6 = vpop.f32.mrb[9].mxu0 }
 0x68a   :  { %v1062_v7 = vmul.f32 %v1061_v5, %v1056_v4  ;;  %v1063_v9 = vmul.f32 %v1061_v5, %v1057_v39 }
 0x68c   :  { %v1074_v10 = vmul.f32 %v1067_v3, %v1062_v7  ;;  %v1075_v11 = vmul.f32 %v1072_v2, %v1063_v9 }
 0x68e   :  { %v1086_v14 = vadd.f32 %v1079_v13, %v1074_v10  ;;  %v1087_v16 = vadd.f32 %v1084_v12, %v1075_v11 }
 0x690   :  { %v1088_v17 = vmul.f32 1.442695, %v1086_v14  ;;  %v1090_v18 = vmul.f32 1.442695, %v1087_v16 }
 0x692   :  { %1478 = vpow2.f32 %v1088_v17 }
 0x693   :  { %1480 = vpow2.f32 %v1090_v18 }
 0x69c   :  { %v1479_v20 = vpop.eup %1478 }
 0x69d   :  { %v1481_v19 = vpop.eup %1480  ;;  %v1092_v21 = vadd.f32 1.0, %v1479_v20 }
 0x69e   :  { %v1093_v24 = vadd.f32 1.0, %v1481_v19 }
 0x69f   :  { %v1094_v22 = vmul.f32 %v1092_v21, %v1092_v21 }
 0x6a0   :  { %v1095_v23 = vmul.f32 %v1093_v24, %v1093_v24 }
 0x6a1   :  { %v1096_v15 = vadd.f32 1.0, %v1094_v22 }
 0x6a2   :  { %v1097_v25 = vadd.f32 1.0, %v1095_v23 }
 0x6a3   :  { %1482 = vrcp.f32 %v1096_v15 }
 0x6a4   :  { %1484 = vrcp.f32 %v1097_v25 }
 0x6ad   :  { %v1483_v26 = vpop.eup %1482 }
 0x6ae   :  { %v1485_v27 = vpop.eup %1484  ;;  %v1099_v28 = vmul.f32 2.0, %v1483_v26 }
 0x6af   :  { %v1101_v29 = vmul.f32 2.0, %v1485_v27 }
 0x6b0   :  { %v1102_v31 = vsub.f32 1.0, %v1099_v28 }
 0x6b1   :  { %v1103_v30 = vsub.f32 1.0, %v1101_v29 }
 0x6b2   :  { %v1104_v35 = vmul.f32 %v1102_v31, %v1086_v14 }
 0x6b3   :  { %v1105_v37 = vmul.f32 %v1103_v30, %v1087_v16 }
 0x6b4   :  { %v1202_v34 = vadd.f32 %v1194_v33, %v1104_v35 }
 0x6b5   :  { %v1203_v38 = vadd.f32 %v1199_v36, %v1105_v37 }
 0x6b6   :  { %1204 = vst.msk [vmem:[#allocation2] sm:$0xff] %vm194_vm13, %v1202_v34 }
 0x6b7   :  { %1205 = vst.msk [vmem:[#allocation2 + $0x8] sm:$0xff] %vm194_vm13, %v1203_v38 }
 0x6b8   :  { %1497 = shalt.err (!%p1494_p4)
}
 0x6b9   :  { %s1498_s26 = scalar_lea.hbm %s1865_s16, 256 }
 0x6ba   :  { %p1499_p5 = scmp.ne.s32.totalorder %s1865_s16, %s1498_s26  ;;  %p1502_p6 = scmp.lt.u32.totalorder %s1498_s26, %s1865_s16 }
 0x6bc   :  { %p1504_p7 = pnand %p1502_p6, %p1499_p5 }
 0x6be   :  { %1507 = shalt.err (!%p1504_p7)
}
 0x6bf   :  { %s1517_s29 = smov 128   ;;  %s1518_s5 = smov 8  }
 0x6c0   :  { %1217 = dma.vmem_to_hbm [thread:$0]  %s1212_s22, 256, %s1865_s16, [#allocation3], %s1517_s29, %s1517_s29, %s1518_s5  }
 0x6c1   :  { %1508 = dma.done.wait [#allocation3], 256  }
 0x6c2   :  { %1509 = vsyncadd [#allocation3], 4294967040 }
 0x6c3   :  { %1221 = vsyncpa [#allocation3], 1 }

</bundles_post_ra>
